<compile_context>
chip_gen: v7x
topology: tpu7x:2x2x1
jax: 0.10.0
libtpu: 0.0.40
codegen_flags: <defaults>
</compile_context>

<pallas_src>
import functools

import jax
import jax.numpy as jnp
from jax.experimental import pallas as pl
from jax.experimental.pallas import tpu as pltpu


def _round_up(x, m):
    return ((x + m - 1) // m) * m


def _critic_kernel(xt_ref, w1t_ref, b1c_ref, w2_ref, b2c_ref, w3_ref, b3c_ref,
                   qt_ref, *, matmul_dtype):
    # Layer 1 (batch on lanes): h1^T = relu(W1 @ x^T + b1)    (H1_PAD, TILE_B)
    h1t = (jnp.dot(w1t_ref[...], xt_ref[...],
                   preferred_element_type=jnp.float32)
           + b1c_ref[...])
    h1t = jnp.maximum(h1t, 0.0)

    # Layer 2: h2^T = sigmoid(W2 @ h1^T + b2)                 (N_H2, TILE_B)
    # K = 128 contraction; optionally bf16 operands (f32 accumulation) on v5e.
    h2t = (jnp.dot(w2_ref[...].astype(matmul_dtype), h1t.astype(matmul_dtype),
                   preferred_element_type=jnp.float32)
           + b2c_ref[...])
    h2t = jax.nn.sigmoid(h2t)

    # Output layer: Q^T = W3 @ h2^T + b3                      (OUT_DIM, TILE_B)
    qt = (jnp.dot(w3_ref[...], h2t, preferred_element_type=jnp.float32)
          + b3c_ref[...])
    qt_ref[...] = qt.astype(qt_ref.dtype)


def critic_forward(s, a, params, *, tile_b=8192, use_bf16_matmul=False):
    """s: (B, state_dim), a: (B, action_dim) -> Q: (B, output_dim)."""
    w1, b1, w2, b2, w3, b3 = params            # PyTorch (out, in) layouts
    batch, state_dim = s.shape
    action_dim = a.shape[1]
    in_dim = state_dim + action_dim
    n_h1 = w1.shape[0]                         # 40
    n_h2 = w2.shape[0]                         # 20
    out_dim = w3.shape[0]

    # --- Pack weights for the transposed (batch-on-lanes) pipeline ----------
    # Hidden layer 1 zero-padded to a full 128-wide feature dim: layer-1 bias
    # pad entries are zero so relu(0) = 0 and the zero-padded W2 columns
    # annihilate them -> numerics are unchanged.
    h1_pad = _round_up(n_h1, 128)
    w1t = jnp.pad(w1, ((0, h1_pad - n_h1), (0, 0)))              # (128, in_dim)
    b1c = jnp.pad(b1, (0, h1_pad - n_h1)).reshape(h1_pad, 1)     # (128, 1)
    w2p = jnp.pad(w2, ((0, 0), (0, h1_pad - n_h1)))              # (20, 128)
    b2c = b2.reshape(n_h2, 1)                                    # (20, 1)
    b3c = b3.reshape(out_dim, 1)                                 # (out, 1)

    # --- Tile sizing ---------------------------------------------------------
    # tile_b must be a multiple of 128 (output/input lane dim).  Clamp it to
    # the rounded batch so small batches are not padded to a huge tile, and
    # split into >= 2 balanced tiles when one tile would cover everything so
    # the "parallel" grid axis can use both v7x TensorCores.
    b_round = _round_up(batch, 128)
    tile_b = max(128, _round_up(min(tile_b, b_round), 128))
    if b_round >= 256 and pl.cdiv(b_round, tile_b) < 2:
        tile_b = _round_up(pl.cdiv(b_round, 2), 128)
    num_tiles = pl.cdiv(b_round, tile_b)
    b_pad = num_tiles * tile_b

    # --- Inputs: merged concat, transposed to (in_dim, B), batch-padded ------
    xt = jnp.concatenate([s, a], axis=1).T                       # (in_dim, B)
    if b_pad != batch:
        xt = jnp.pad(xt, ((0, 0), (0, b_pad - batch)))

    cost = pl.CostEstimate(
        flops=2 * b_pad * (in_dim * n_h1 + n_h1 * n_h2 + n_h2 * out_dim),
        transcendentals=b_pad * n_h2,
        bytes_accessed=4 * (b_pad * (in_dim + out_dim)
                            + in_dim * n_h1 + n_h1 * n_h2 + n_h2 * out_dim
                            + n_h1 + n_h2 + out_dim),
    )

    def weight_spec(shape):
        # Full-array block, constant index_map -> stays VMEM-resident across
        # all grid steps.
        return pl.BlockSpec(shape, lambda i: (0, 0))

    kernel = functools.partial(
        _critic_kernel,
        matmul_dtype=jnp.bfloat16 if use_bf16_matmul else jnp.float32,
    )

    qt = pl.pallas_call(
        kernel,
        out_shape=jax.ShapeDtypeStruct((out_dim, b_pad), jnp.float32),
        grid=(num_tiles,),
        in_specs=[
            pl.BlockSpec((in_dim, tile_b), lambda i: (0, i)),    # x^T
            weight_spec((h1_pad, in_dim)),                       # W1 (padded)
            weight_spec((h1_pad, 1)),                            # b1 (column)
            weight_spec((n_h2, h1_pad)),                         # W2 (padded)
            weight_spec((n_h2, 1)),                              # b2 (column)
            weight_spec((out_dim, n_h2)),                        # W3
            weight_spec((out_dim, 1)),                           # b3 (column)
        ],
        out_specs=pl.BlockSpec((out_dim, tile_b), lambda i: (0, i)),
        compiler_params=pltpu.CompilerParams(
            dimension_semantics=("parallel",)),
        cost_estimate=cost,
    )(xt, w1t, b1c, w2p, b2c, w3, b3c)

    # Lane-dense (out_dim, B_pad) result -> (B, out_dim) (tiny layout plumbing).
    return qt[:, :batch].T


def init_params(key, state_dim, action_dim, output_dim):
    """Mirror the module init: weights ~ N(0, 0.1), biases uniform(+-1/sqrt(fan_in)).
    All weights kept in PyTorch (out, in) layout."""
    in_dim = state_dim + action_dim
    ks = jax.random.split(key, 6)
    w1 = 0.1 * jax.random.normal(ks[0], (40, in_dim), dtype=jnp.float32)
    b1 = jax.random.uniform(ks[1], (40,), minval=-1.0 / in_dim ** 0.5,
                            maxval=1.0 / in_dim ** 0.5, dtype=jnp.float32)
    w2 = 0.1 * jax.random.normal(ks[2], (20, 40), dtype=jnp.float32)
    b2 = jax.random.uniform(ks[3], (20,), minval=-1.0 / 40 ** 0.5,
                            maxval=1.0 / 40 ** 0.5, dtype=jnp.float32)
    w3 = 0.1 * jax.random.normal(ks[4], (output_dim, 20), dtype=jnp.float32)
    b3 = jax.random.uniform(ks[5], (output_dim,), minval=-1.0 / 20 ** 0.5,
                            maxval=1.0 / 20 ** 0.5, dtype=jnp.float32)
    return (w1, b1, w2, b2, w3, b3)


def _reference(s, a, params):
    w1, b1, w2, b2, w3, b3 = params
    x = jnp.concatenate([s, a], axis=1)
    h1 = jnp.maximum(x @ w1.T + b1[None, :], 0.0)
    h2 = jax.nn.sigmoid(h1 @ w2.T + b2[None, :])
    return h2 @ w3.T + b3[None, :]


if __name__ == "__main__":
    # Small shapes consistent with a UAV critic: state_dim=3, action_dim=1.
    batch, state_dim, action_dim, output_dim = 8, 3, 1, 1

    key = jax.random.PRNGKey(0)
    k_s, k_a, k_p = jax.random.split(key, 3)
    s = jax.random.normal(k_s, (batch, state_dim), dtype=jnp.float32)
    a = jax.random.normal(k_a, (batch, action_dim), dtype=jnp.float32)
    params = init_params(k_p, state_dim, action_dim, output_dim)

    q = critic_forward(s, a, params)
    q = jax.block_until_ready(q)

    q_ref = _reference(s, a, params)
    assert q.shape == (batch, output_dim)
    assert jnp.allclose(q, q_ref, atol=1e-4, rtol=1e-4), \
        float(jnp.max(jnp.abs(q - q_ref)))

    print("KERNEL_OK")
</pallas_src>

<mosaic_0001>
module attributes {stable_mosaic.version = 11 : i64} {
  func.func @_critic_kernel(%arg0: i32, %arg1: memref<4x128xf32, #tpu.memory_space<vmem>>, %arg2: memref<128x4xf32, #tpu.memory_space<vmem>>, %arg3: memref<128x1xf32, #tpu.memory_space<vmem>>, %arg4: memref<20x128xf32, #tpu.memory_space<vmem>>, %arg5: memref<20x1xf32, #tpu.memory_space<vmem>>, %arg6: memref<1x20xf32, #tpu.memory_space<vmem>>, %arg7: memref<1x1xf32, #tpu.memory_space<vmem>>, %arg8: memref<1x128xf32, #tpu.memory_space<vmem>>) attributes {dimension_semantics = [#tpu.dimension_semantics<parallel>], iteration_bounds = array<i64: 1>, scalar_prefetch = 0 : i64, scratch_operands = 0 : i64, tpu.core_type = #tpu.core_type<tc>, window_params = [{transform_indices = @transform_0, window_bounds = array<i64: 4, 128>}, {pipeline_mode = #tpu.pipeline_mode<synchronous>, transform_indices = @transform_1, window_bounds = array<i64: 128, 4>}, {pipeline_mode = #tpu.pipeline_mode<synchronous>, transform_indices = @transform_2, window_bounds = array<i64: 128, 1>}, {pipeline_mode = #tpu.pipeline_mode<synchronous>, transform_indices = @transform_3, window_bounds = array<i64: 20, 128>}, {pipeline_mode = #tpu.pipeline_mode<synchronous>, transform_indices = @transform_4, window_bounds = array<i64: 20, 1>}, {pipeline_mode = #tpu.pipeline_mode<synchronous>, transform_indices = @transform_5, window_bounds = array<i64: 1, 20>}, {pipeline_mode = #tpu.pipeline_mode<synchronous>, transform_indices = @transform_6, window_bounds = array<i64: 1, 1>}, {transform_indices = @transform_7, window_bounds = array<i64: 1, 128>}]} {
    %c0 = arith.constant 0 : index
    %c0_0 = arith.constant 0 : index
    %0 = vector.load %arg2[%c0, %c0_0] : memref<128x4xf32, #tpu.memory_space<vmem>>, vector<128x4xf32>
    %c0_1 = arith.constant 0 : index
    %c0_2 = arith.constant 0 : index
    %1 = vector.load %arg1[%c0_1, %c0_2] : memref<4x128xf32, #tpu.memory_space<vmem>>, vector<4x128xf32>
    %cst = arith.constant dense<0.000000e+00> : vector<128x128xf32>
    %2 = tpu.matmul %0, %1, %cst {dimension_numbers = #tpu.dot_dimension_numbers<[1], [0], [0], [1], [0, 0, 1, 1], [], []>} : vector<128x4xf32>, vector<4x128xf32>, vector<128x128xf32> -> vector<128x128xf32>
    %c0_3 = arith.constant 0 : index
    %c0_4 = arith.constant 0 : index
    %3 = vector.load %arg3[%c0_3, %c0_4] : memref<128x1xf32, #tpu.memory_space<vmem>>, vector<128x1xf32>
    %4 = vector.broadcast %3 : vector<128x1xf32> to vector<128x128xf32>
    %5 = arith.addf %2, %4 : vector<128x128xf32>
    %cst_5 = arith.constant 0.000000e+00 : f32
    %6 = vector.broadcast %cst_5 : f32 to vector<128x128xf32>
    %7 = arith.maximumf %5, %6 : vector<128x128xf32>
    %c0_6 = arith.constant 0 : index
    %c0_7 = arith.constant 0 : index
    %8 = vector.load %arg4[%c0_6, %c0_7] : memref<20x128xf32, #tpu.memory_space<vmem>>, vector<20x128xf32>
    %cst_8 = arith.constant dense<0.000000e+00> : vector<20x128xf32>
    %9 = tpu.matmul %8, %7, %cst_8 {dimension_numbers = #tpu.dot_dimension_numbers<[1], [0], [0], [1], [0, 0, 1, 1], [], []>} : vector<20x128xf32>, vector<128x128xf32>, vector<20x128xf32> -> vector<20x128xf32>
    %c0_9 = arith.constant 0 : index
    %c0_10 = arith.constant 0 : index
    %10 = vector.load %arg5[%c0_9, %c0_10] : memref<20x1xf32, #tpu.memory_space<vmem>>, vector<20x1xf32>
    %11 = vector.broadcast %10 : vector<20x1xf32> to vector<20x128xf32>
    %12 = arith.addf %9, %11 : vector<20x128xf32>
    %13 = arith.negf %12 : vector<20x128xf32>
    %14 = math.exp %13 : vector<20x128xf32>
    %cst_11 = arith.constant 1.000000e+00 : f32
    %15 = vector.broadcast %cst_11 : f32 to vector<20x128xf32>
    %16 = arith.addf %15, %14 : vector<20x128xf32>
    %17 = arith.divf %15, %16 : vector<20x128xf32>
    %c0_12 = arith.constant 0 : index
    %c0_13 = arith.constant 0 : index
    %18 = vector.load %arg6[%c0_12, %c0_13] : memref<1x20xf32, #tpu.memory_space<vmem>>, vector<1x20xf32>
    %cst_14 = arith.constant dense<0.000000e+00> : vector<1x128xf32>
    %19 = tpu.matmul %18, %17, %cst_14 {dimension_numbers = #tpu.dot_dimension_numbers<[1], [0], [0], [1], [0, 0, 1, 1], [], []>} : vector<1x20xf32>, vector<20x128xf32>, vector<1x128xf32> -> vector<1x128xf32>
    %c0_15 = arith.constant 0 : index
    %c0_16 = arith.constant 0 : index
    %20 = vector.load %arg7[%c0_15, %c0_16] : memref<1x1xf32, #tpu.memory_space<vmem>>, vector<1x1xf32>
    %21 = vector.broadcast %20 : vector<1x1xf32> to vector<1x128xf32>
    %22 = arith.addf %19, %21 : vector<1x128xf32>
    %c0_17 = arith.constant 0 : index
    %c0_18 = arith.constant 0 : index
    %23 = vector.load %arg8[%c0_17, %c0_18] : memref<1x128xf32, #tpu.memory_space<vmem>>, vector<1x128xf32>
    tpu.vector_store %arg8[%c0_17, %c0_18], %22 {strides = array<i32>} : memref<1x128xf32, #tpu.memory_space<vmem>>, vector<1x128xf32>,
    return
  }
  func.func @transform_0(%arg0: i32) -> (i32, i32) {
    %c0_i32 = arith.constant 0 : i32
    %c0_i32_0 = arith.constant 0 : i32
    return %c0_i32, %arg0 : i32, i32
  }
  func.func @transform_1(%arg0: i32) -> (i32, i32) {
    %c0_i32 = arith.constant 0 : i32
    %c0_i32_0 = arith.constant 0 : i32
    %c0_i32_1 = arith.constant 0 : i32
    return %c0_i32, %c0_i32_0 : i32, i32
  }
  func.func @transform_2(%arg0: i32) -> (i32, i32) {
    %c0_i32 = arith.constant 0 : i32
    %c0_i32_0 = arith.constant 0 : i32
    %c0_i32_1 = arith.constant 0 : i32
    return %c0_i32, %c0_i32_0 : i32, i32
  }
  func.func @transform_3(%arg0: i32) -> (i32, i32) {
    %c0_i32 = arith.constant 0 : i32
    %c0_i32_0 = arith.constant 0 : i32
    %c0_i32_1 = arith.constant 0 : i32
    return %c0_i32, %c0_i32_0 : i32, i32
  }
  func.func @transform_4(%arg0: i32) -> (i32, i32) {
    %c0_i32 = arith.constant 0 : i32
    %c0_i32_0 = arith.constant 0 : i32
    %c0_i32_1 = arith.constant 0 : i32
    return %c0_i32, %c0_i32_0 : i32, i32
  }
  func.func @transform_5(%arg0: i32) -> (i32, i32) {
    %c0_i32 = arith.constant 0 : i32
    %c0_i32_0 = arith.constant 0 : i32
    %c0_i32_1 = arith.constant 0 : i32
    return %c0_i32, %c0_i32_0 : i32, i32
  }
  func.func @transform_6(%arg0: i32) -> (i32, i32) {
    %c0_i32 = arith.constant 0 : i32
    %c0_i32_0 = arith.constant 0 : i32
    %c0_i32_1 = arith.constant 0 : i32
    return %c0_i32, %c0_i32_0 : i32, i32
  }
  func.func @transform_7(%arg0: i32) -> (i32, i32) {
    %c0_i32 = arith.constant 0 : i32
    %c0_i32_0 = arith.constant 0 : i32
    return %c0_i32, %arg0 : i32, i32
  }
}

</mosaic_0001>

<bundles_post_ra>
// kernel: tpu_custom_call.1
= control target key start
LH: loop header
LB: loop body
LE: loop exit
PB: predicated region body
PF: predicated region fallthrough
CT: control target
= control target key end

     0   :  { %s1003_s0 = inlined_call_operand.vmem [shape: f32[4,128], index: 0, kind: input, shape index: {}]   ;;  %s1004_s1 = inlined_call_operand.vmem [shape: f32[128,4], index: 1, kind: input, shape index: {}]   ;;  %s1005_s2 = inlined_call_operand.vmem [shape: f32[128,1], index: 2, kind: input, shape index: {}]   ;;  %s1006_s3 = inlined_call_operand.vmem [shape: f32[20,128], index: 3, kind: input, shape index: {}]   ;;  %s1007_s4 = inlined_call_operand.vmem [shape: f32[20,1], index: 4, kind: input, shape index: {}]   ;;  %s1008_s5 = inlined_call_operand.vmem [shape: f32[1,20], index: 5, kind: input, shape index: {}]   ;;  %s1009_s6 = inlined_call_operand.<no memory space> [shape: f32[1,1], index: 6, kind: input, shape index: {}]   ;;  %s1010_s7 = inlined_call_operand.hbm [shape: f32[1,128], index: 7, kind: output, shape index: {}]  }
   0x1   :  { %v12_v0 = vstv %s1009_s6 }
   0x2   :  { %13 = vst [vmem:[#allocation2] sm:$0x1] %v12_v0 }
   0x3   :  { %v45_v1 = vld [vmem:[%s1003_s0] sm:$0xf]  ;;  %vm191_vm0 = vcmask 1043456   ;;  %vm142_vm1 = vcmask 31744   ;;  %v30_v3 = vld [vmem:[%s1004_s1 + $0x8] sm:$0xff]  ;;  %v31_v4 = vld [vmem:[%s1004_s1 + $0x10] sm:$0xff] }
   0x4   :  { %v29_v2 = vld [vmem:[%s1004_s1] sm:$0xff]  ;;  %640 = vmatprep.subr.msk.mxu0 %vm191_vm0, %v45_v1  ;;  %v786_v5 = vmov 0   ;;  %v32_v6 = vld [vmem:[%s1004_s1 + $0x18] sm:$0xff]  ;;  %v48_v9 = vld [vmem:[%s1005_s2 + $0x10] sm:$0xff] }
   0x5   :  { %642 = vmatprep.mubr.msk.f32.mxu0 %vm142_vm1, %v29_v2  ;;  %641 = vmatpush3.msk.msra.mxu0 %vm191_vm0, %v45_v1  ;;  %v33_v7 = vld [vmem:[%s1004_s1 + $0x20] sm:$0xff]  ;;  %v47_v10 = vld [vmem:[%s1005_s2 + $0x8] sm:$0xff]  ;;  %v49_v12 = vld [vmem:[%s1005_s2 + $0x18] sm:$0xff] }
   0x6   :  { %748 = vset.pattern.permute.xlu0 %v786_v5  ;;  %643 = vmatmul.mubr.msk.f32.vlgmr.msra.gmra.mrb[0].mxu0 %vm142_vm1, %v30_v3  ;;  %v46_v8 = vld [vmem:[%s1005_s2] sm:$0xff]  ;;  %v34_v11 = vld [vmem:[%s1004_s1 + $0x28] sm:$0xff]  ;;  %v35_v13 = vld [vmem:[%s1004_s1 + $0x30] sm:$0xff] }
   0x7   :  { %749 = vset.pattern.permute.xlu1 %v786_v5  ;;  %645 = vmatprep.mubr.msk.f32.mxu0 %vm142_vm1, %v31_v4  ;;  %v50_v14 = vld [vmem:[%s1005_s2 + $0x20] sm:$0xff]  ;;  %v36_v15 = vld [vmem:[%s1004_s1 + $0x38] sm:$0xff]  ;;  %v51_v16 = vld [vmem:[%s1005_s2 + $0x28] sm:$0xff] }
   0x8   :  { %64 = vperm.xlu0 %748, %v46_v8   ;;  %74 = vperm.xlu1 %749, %v48_v9  }
   0xa   :  { %646 = vmatmul.mubr.msk.f32.gmra.mrb[2].mxu0 %vm142_vm1, %v32_v6 }
   0xb   :  { %648 = vmatprep.mubr.msk.f32.mxu0 %vm142_vm1, %v33_v7 }
   0xc   :  { %69 = vperm.xlu0 %748, %v47_v10   ;;  %79 = vperm.xlu1 %749, %v49_v12  }
   0xe   :  { %649 = vmatmul.mubr.msk.f32.gmra.mrb[4].mxu0 %vm142_vm1, %v34_v11 }
   0xf   :  { %651 = vmatprep.mubr.msk.f32.mxu0 %vm142_vm1, %v35_v13 }
  0x10   :  { %14 = vsyncpa [#allocation4], 0  ;;  %v37_v17 = vld [vmem:[%s1004_s1 + $0x40] sm:$0xff]  ;;  %84 = vperm.xlu0 %748, %v50_v14   ;;  %89 = vperm.xlu1 %749, %v51_v16   ;;  %v52_v18 = vld [vmem:[%s1005_s2 + $0x30] sm:$0xff]  ;;  %v787_v39 = vmov 0.0|0.0   ;;  %vm788_vm2 = vmmov 0  }
  0x11   :  { %v38_v19 = vld [vmem:[%s1004_s1 + $0x48] sm:$0xff]  ;;  %v53_v20 = vld [vmem:[%s1005_s2 + $0x38] sm:$0xff]  ;;  %v39_v21 = vld [vmem:[%s1004_s1 + $0x50] sm:$0xff]  ;;  %716 = vmatprep.subr.bf16.mxu1 %v787_v39  ;;  %740 = vmatprep.subr.bf16.mxu0 %v787_v39  ;;  %v789_v40 = vmov 0.0   ;;  %vm486_vm3 = vcmask 162816   ;;  %s790_s27 = smov [#allocation3]  }
  0x12   :  { %652 = vmatmul.mubr.msk.f32.gmra.mrb[6].mxu0 %vm142_vm1, %v36_v15  ;;  %v54_v22 = vld [vmem:[%s1005_s2 + $0x40] sm:$0xff]  ;;  %v40_v23 = vld [vmem:[%s1004_s1 + $0x58] sm:$0xff]  ;;  %v55_v24 = vld [vmem:[%s1005_s2 + $0x48] sm:$0xff]  ;;  %698 = vmatprep.mubr.msk.f32.mxu1 %vm788_vm2, %v789_v40  ;;  %s570_s28 = sshll.u32 %s790_s27, 4  ;;  %s571_s28 = int_to_ptr.vmem [resolvable:$true] %s570_s28 }
  0x13   :  { %654 = vmatprep.mubr.msk.f32.mxu0 %vm142_vm1, %v37_v17  ;;  %v41_v25 = vld [vmem:[%s1004_s1 + $0x60] sm:$0xff]  ;;  %v56_v26 = vld [vmem:[%s1005_s2 + $0x50] sm:$0xff]  ;;  %v42_v27 = vld [vmem:[%s1004_s1 + $0x68] sm:$0xff]  ;;  %s762_s29 = scalar_lea.vmem %s571_s28, 16  ;;  %p767_p1 = scmp.lt.s32.totalorder %s571_s28, %s571_s28 }
  0x14   :  { %94 = vperm.xlu0 %748, %v52_v18   ;;  %99 = vperm.xlu1 %749, %v53_v20   ;;  %v57_v28 = vld [vmem:[%s1005_s2 + $0x58] sm:$0xff]  ;;  %v43_v29 = vld [vmem:[%s1004_s1 + $0x70] sm:$0xff]  ;;  %v58_v30 = vld [vmem:[%s1005_s2 + $0x60] sm:$0xff]  ;;  %p763_p0 = scmp.ne.s32.totalorder %s571_s28, %s762_s29 }
  0x15   :  { %v44_v31 = vld [vmem:[%s1004_s1 + $0x78] sm:$0xff]  ;;  %v59_v32 = vld [vmem:[%s1005_s2 + $0x68] sm:$0xff]  ;;  %v60_v33 = vld [vmem:[%s1005_s2 + $0x70] sm:$0xff] }
  0x16   :  { %655 = vmatmul.mubr.msk.f32.gmra.mrb[8].mxu0 %vm142_vm1, %v38_v19  ;;  %v61_v34 = vld [vmem:[%s1005_s2 + $0x78] sm:$0xff]  ;;  %v359_v35 = vld [vmem:[%s1007_s4] sm:$0xff]  ;;  %v360_v36 = vld [vmem:[%s1007_s4 + $0x8] sm:$0xff] }
  0x17   :  { %657 = vmatprep.mubr.msk.f32.mxu0 %vm142_vm1, %v39_v21  ;;  %v361_v37 = vld [vmem:[%s1007_s4 + $0x10] sm:$0xf]  ;;  %v476_v38 = vld [vmem:[#allocation2] sm:$0x1] }
  0x18   :  { %104 = vperm.xlu0 %748, %v54_v22   ;;  %109 = vperm.xlu1 %749, %v55_v24  }
  0x1a   :  { %658 = vmatmul.mubr.msk.f32.gmra.mrb[10].mxu0 %vm142_vm1, %v40_v23 }
  0x1b   :  { %660 = vmatprep.mubr.msk.f32.mxu0 %vm142_vm1, %v41_v25 }
  0x1c   :  { %114 = vperm.xlu0 %748, %v56_v26   ;;  %119 = vperm.xlu1 %749, %v57_v28  }
  0x1e   :  { %661 = vmatmul.mubr.msk.f32.gmra.mrb[12].mxu0 %vm142_vm1, %v42_v27 }
  0x1f   :  { %663 = vmatprep.mubr.msk.f32.mxu0 %vm142_vm1, %v43_v29 }
  0x20   :  { %124 = vperm.xlu0 %748, %v58_v30   ;;  %129 = vperm.xlu1 %749, %v59_v32  }
  0x22   :  { %664 = vmatmul.mubr.msk.f32.gmra.mrb[14].mxu0 %vm142_vm1, %v44_v31 }
  0x23   :  { %713 = vmatprep.mubr.msk.f32.mxu0 %vm788_vm2, %v789_v40 }
  0x24   :  { %134 = vperm.xlu0 %748, %v60_v33   ;;  %139 = vperm.xlu1 %749, %v61_v34  }
  0x28   :  { %364 = vperm.xlu0 %748, %v359_v35   ;;  %369 = vperm.xlu1 %749, %v360_v36  }
  0x2c   :  { %374 = vperm.xlu0 %748, %v361_v37   ;;  %479 = vperm.xlu1 %749, %v476_v38  }
  0x87   :  { %v75_v41 = vpop.permute.xlu1 %74  ;;  %v65_v42 = vpop.permute.xlu0 %64 }
  0x8b   :  { %v80_v43 = vpop.permute.xlu1 %79  ;;  %v70_v44 = vpop.permute.xlu0 %69 }
  0x8f   :  { %v90_v45 = vpop.permute.xlu1 %89  ;;  %v85_v46 = vpop.permute.xlu0 %84 }
  0x93   :  { %v100_v52 = vpop.permute.xlu1 %99  ;;  %v95_v55 = vpop.permute.xlu0 %94 }
  0x97   :  { %v110_v1 = vpop.permute.xlu1 %109  ;;  %v105_v4 = vpop.permute.xlu0 %104 }
  0x9b   :  { %v120_v13 = vpop.permute.xlu1 %119  ;;  %v115_v16 = vpop.permute.xlu0 %114 }
  0x9f   :  { %v130_v26 = vpop.permute.xlu1 %129  ;;  %v125_v29 = vpop.permute.xlu0 %124 }
  0xa3   :  { %v140_v38 = vpop.permute.xlu1 %139 }
  0xd9   :  { %v644_v47 = vpop.f32.mrb[0].mxu0 }
  0xda   :  { %v267_v48 = vadd.f32 %v644_v47, %v70_v44  ;;  %v261_v49 = vpop.f32.mrb[1].mxu0 }
  0xdb   :  { %v262_v50 = vadd.f32 %v261_v49, %v65_v42 }
  0xdc   :  { %v341_v51 = vmax.f32 %v267_v48, 0.0 }
  0xdd   :  { %v340_v53 = vmax.f32 %v262_v50, 0.0  ;;  %v647_v54 = vpop.f32.mrb[2].mxu0 }
  0xde   :  { %v277_v56 = vadd.f32 %v647_v54, %v80_v43  ;;  %v271_v57 = vpop.f32.mrb[3].mxu0  ;;  %v135_v43 = vpop.permute.xlu0 %134 }
  0xdf   :  { %v272_v58 = vadd.f32 %v271_v57, %v75_v41  ;;  %v717_v59 = vpack.c.bf16 %v341_v51, %v340_v53  ;;  %v356_v51 = vld [vmem:[%s1006_s3] sm:$0xff] }
  0xe0   :  { %v343_v60 = vmax.f32 %v277_v56, 0.0 }
  0xe1   :  { %v342_v61 = vmax.f32 %v272_v58, 0.0  ;;  %v650_v62 = vpop.f32.mrb[4].mxu0  ;;  %718 = vmatpush3.bf16.msra.mxu1 %v717_v59  ;;  %v370_v58 = vpop.permute.xlu1 %369 }
  0xe2   :  { %v287_v63 = vadd.f32 %v650_v62, %v90_v45  ;;  %v281_v0 = vpop.f32.mrb[5].mxu0  ;;  %719 = vmatprep.subr.bf16.mxu1 %v787_v39  ;;  %v365_v53 = vpop.permute.xlu0 %364 }
  0xe3   :  { %v720_v2 = vpack.c.bf16 %v343_v60, %v342_v61  ;;  %v282_v3 = vadd.f32 %v281_v0, %v85_v46 }
  0xe4   :  { %v345_v5 = vmax.f32 %v287_v63, 0.0 }
  0xe5   :  { %v344_v6 = vmax.f32 %v282_v3, 0.0  ;;  %v653_v7 = vpop.f32.mrb[6].mxu0  ;;  %721 = vmatpush3.bf16.msra.mxu1 %v720_v2 }
  0xe6   :  { %v297_v8 = vadd.f32 %v653_v7, %v100_v52  ;;  %v291_v9 = vpop.f32.mrb[7].mxu0  ;;  %722 = vmatprep.subr.bf16.mxu1 %v787_v39  ;;  %v357_v52 = vld [vmem:[%s1006_s3 + $0x8] sm:$0xff]  ;;  %v375_v63 = vpop.permute.xlu0 %374 }
  0xe7   :  { %v723_v10 = vpack.c.bf16 %v345_v5, %v344_v6  ;;  %v292_v11 = vadd.f32 %v291_v9, %v95_v55 }
  0xe8   :  { %v347_v12 = vmax.f32 %v297_v8, 0.0 }
  0xe9   :  { %v346_v14 = vmax.f32 %v292_v11, 0.0  ;;  %v656_v15 = vpop.f32.mrb[8].mxu0  ;;  %724 = vmatpush3.bf16.msra.mxu1 %v723_v10 }
  0xea   :  { %v307_v17 = vadd.f32 %v656_v15, %v110_v1  ;;  %v301_v18 = vpop.f32.mrb[9].mxu0  ;;  %725 = vmatprep.subr.bf16.mxu1 %v787_v39  ;;  %v482_v15 = vlaneseq }
  0xeb   :  { %v726_v19 = vpack.c.bf16 %v347_v12, %v346_v14  ;;  %v302_v20 = vadd.f32 %v301_v18, %v105_v4  ;;  %v480_v18 = vpop.permute.xlu1 %479 }
  0xec   :  { %v349_v21 = vmax.f32 %v307_v17, 0.0 }
  0xed   :  { %v348_v22 = vmax.f32 %v302_v20, 0.0  ;;  %v659_v23 = vpop.f32.mrb[10].mxu0  ;;  %727 = vmatpush3.bf16.msra.mxu1 %v726_v19 }
  0xee   :  { %v317_v24 = vadd.f32 %v659_v23, %v120_v13  ;;  %v311_v25 = vpop.f32.mrb[11].mxu0  ;;  %728 = vmatprep.subr.bf16.mxu1 %v787_v39  ;;  %v475_v13 = vld [vmem:[%s1008_s5] sm:$0x1]  ;;  %s766_s5 = scalar_lea.vmem %s571_s28, 32 }
  0xef   :  { %v729_v27 = vpack.c.bf16 %v349_v21, %v348_v22  ;;  %v312_v28 = vadd.f32 %v311_v25, %v115_v16  ;;  %v483_v16 = vshrl.u32 %v482_v15, 7  ;;  %p768_p2 = scmp.lt.s32.totalorder %s766_s5, %s762_s29 }
  0xf0   :  { %v351_v30 = vmax.f32 %v317_v24, 0.0 }
  0xf1   :  { %v350_v31 = vmax.f32 %v312_v28, 0.0  ;;  %v662_v32 = vpop.f32.mrb[12].mxu0  ;;  %730 = vmatpush3.bf16.msra.mxu1 %v729_v27  ;;  %v484_v17 = vsub.s32 0, %v483_v16  ;;  %p769_p3 = por %p768_p2, %p767_p1 }
  0xf2   :  { %v327_v33 = vadd.f32 %v662_v32, %v130_v26  ;;  %v321_v34 = vpop.f32.mrb[13].mxu0  ;;  %731 = vmatprep.subr.bf16.mxu1 %v787_v39 }
  0xf3   :  { %v732_v35 = vpack.c.bf16 %v351_v30, %v350_v31  ;;  %v322_v36 = vadd.f32 %v321_v34, %v125_v29  ;;  %v485_v19 = vrot.slane %v480_v18, %v484_v17  ;;  %p770_p4 = pnand %p769_p3, %p763_p0 }
  0xf4   :  { %v353_v37 = vmax.f32 %v327_v33, 0.0 }
  0xf5   :  { %v352_v41 = vmax.f32 %v322_v36, 0.0  ;;  %v665_v42 = vpop.f32.mrb[14].mxu0  ;;  %733 = vmatpush3.bf16.msra.mxu1 %v732_v35 }
  0xf6   :  { %v337_v44 = vadd.f32 %v665_v42, %v140_v38  ;;  %v331_v45 = vpop.f32.mrb[15].mxu0  ;;  %734 = vmatprep.subr.bf16.mxu1 %v787_v39 }
  0xf7   :  { %v735_v46 = vpack.c.bf16 %v353_v37, %v352_v41  ;;  %v332_v47 = vadd.f32 %v331_v45, %v135_v43 }
  0xf8   :  { %v355_v48 = vmax.f32 %v337_v44, 0.0 }
  0xf9   :  { %v354_v49 = vmax.f32 %v332_v47, 0.0  ;;  %736 = vmatpush3.bf16.msra.mxu1 %v735_v46 }
  0xfa   :  { %737 = vmatprep.subr.bf16.mxu1 %v787_v39  ;;  %v358_v39 = vld [vmem:[%s1006_s3 + $0x10] sm:$0xf] }
  0xfb   :  { %v738_v50 = vpack.c.bf16 %v355_v48, %v354_v49 }
  0xfd   :  { %739 = vmatpush3.bf16.msra.mxu1 %v738_v50 }
 0x100   :  { %699 = vmatmul.mubr.f32.vlgmr.msra.gmra.mrb[0].mxu1 %v356_v51 }
 0x101   :  { %701 = vmatprep.mubr.msk.f32.mxu1 %vm788_vm2, %v789_v40 }
 0x104   :  { %702 = vmatmul.mubr.f32.gmra.mrb[2].mxu1 %v357_v52 }
 0x105   :  { %704 = vmatprep.mubr.msk.f32.mxu1 %vm788_vm2, %v789_v40 }
 0x108   :  { %705 = vmatmul.mubr.f32.gmra.mrb[4].mxu1 %v358_v39 }
 0x1d3   :  { %v443_v54 = vpop.f32.mrb[0].mxu1 }
 0x1d4   :  { %v444_v55 = vadd.f32 %v443_v54, %v365_v53  ;;  %v700_v56 = vpop.f32.mrb[1].mxu1 }
 0x1d6   :  { %v595_v57 = vmul.f32 -1.442695, %v444_v55 }
 0x1d7   :  { %v448_v59 = vpop.f32.mrb[2].mxu1 }
 0x1d8   :  { %750 = vpow2.f32 %v595_v57  ;;  %v449_v60 = vadd.f32 %v448_v59, %v370_v58  ;;  %v703_v61 = vpop.f32.mrb[3].mxu1 }
 0x1da   :  { %v596_v62 = vmul.f32 -1.442695, %v449_v60 }
 0x1db   :  { %v453_v0 = vpop.f32.mrb[4].mxu1 }
 0x1dc   :  { %752 = vpow2.f32 %v596_v62  ;;  %v454_v1 = vadd.f32 %v453_v0, %v375_v63  ;;  %v706_v2 = vpop.f32.mrb[5].mxu1 }
 0x1de   :  { %v597_v3 = vmul.f32 -1.442695, %v454_v1 }
 0x1e0   :  { %754 = vpow2.f32 %v597_v3 }
 0x1e2   :  { %v751_v4 = vpop.eup %750 }
 0x1e3   :  { %v466_v5 = vadd.f32 1.0, %v751_v4 }
 0x1e5   :  { %756 = vrcp.f32 %v466_v5 }
 0x1e6   :  { %v753_v6 = vpop.eup %752 }
 0x1e7   :  { %v467_v7 = vadd.f32 1.0, %v753_v6 }
 0x1e9   :  { %758 = vrcp.f32 %v467_v7 }
 0x1ea   :  { %v755_v8 = vpop.eup %754 }
 0x1eb   :  { %v468_v9 = vadd.f32 1.0, %v755_v8 }
 0x1ed   :  { %760 = vrcp.f32 %v468_v9 }
 0x1ef   :  { %v757_v10 = vpop.eup %756 }
 0x1f3   :  { %v759_v11 = vpop.eup %758 }
 0x1f4   :  { %v741_v12 = vpack.c.bf16 %v759_v11, %v757_v10 }
 0x1f6   :  { %742 = vmatpush3.bf16.msra.mxu0 %v741_v12 }
 0x1f7   :  { %711 = vmatprep.subr.mxu0 %v789_v40  ;;  %v761_v14 = vpop.eup %760 }
 0x1fa   :  { %712 = vmatpush3.msk.msra.mxu0 %vm191_vm0, %v761_v14 }
 0x1fb   :  { %714 = vmatmul.mubr.msk.f32.vlgmr.msra.gmra.mrb[16].mxu0 %vm486_vm3, %v475_v13 }
 0x2ce   :  { %v559_v20 = vpop.f32.mrb[16].mxu0 }
 0x2cf   :  { %v560_v21 = vadd.f32 %v559_v20, %v485_v19  ;;  %v715_v22 = vpop.f32.mrb[17].mxu0 }
 0x2d1   :  { %563 = vst [vmem:[#allocation3] sm:$0x1] %v560_v21 }
 0x2d2   :  { %773 = shalt.err (!%p770_p4)
}
 0x2d3   :  { %s774_s6 = scalar_lea.hbm %s1010_s7, 16 }
 0x2d4   :  { %p775_p5 = scmp.ne.s32.totalorder %s1010_s7, %s774_s6  ;;  %p778_p6 = scmp.lt.u32.totalorder %s774_s6, %s1010_s7 }
 0x2d6   :  { %p780_p7 = pnand %p778_p6, %p775_p5 }
 0x2d8   :  { %783 = shalt.err (!%p780_p7)
}
 0x2d9   :  { %573 = dma.vmem_to_hbm [thread:$0]  %s571_s28, 16, %s1010_s7, [#allocation4]  }
 0x2da   :  { %784 = dma.done.wait [#allocation4], 16  }
 0x2db   :  { %785 = vsyncadd [#allocation4], 4294967280 }
 0x2dc   :  { %577 = vsyncpa [#allocation4], 1 }

</bundles_post_ra>
